<compile_context>
chip_gen: v5e
topology: v5e:2x2
jax: 0.10.0
libtpu: 0.0.40
codegen_flags: <defaults>
</compile_context>

<pallas_src>
import functools

import jax
import jax.numpy as jnp
from jax.experimental import pallas as pl
from jax.experimental.pallas import tpu as pltpu

LANE = 128  # TPU lane width; the 24-wide hidden dim is padded to this.


def _round_up(n, m):
    return ((n + m - 1) // m) * m


def _pick_tile(B, block_b):
    """Batch tile: multiple of 8, <= block_b, >=2 blocks for B>=16 (v7x 2 TCs),
    preferring a tile that divides B exactly (no jnp.pad copy of x)."""
    tb = min(block_b, _round_up(B, 8))
    if B >= 16:
        tb = min(tb, _round_up(-(-B // 2), 8))
    for cand in range(tb, 7, -8):
        if B % cand == 0:
            return cand
    return tb


def dqn_kernel(x_ref, w1_ref, w2_ref, w3_ref, bias_ref, o_ref):
    """One batch tile: three MXU matmuls, f32 bias/ReLU, narrow Q store."""
    wd = w1_ref.dtype                 # MXU operand dtype (bf16 or f32)
    out_n = o_ref.shape[-1]           # narrow output lanes (action_dim padded to 8)

    bias = bias_ref[...]              # (3, 128) f32, resident
    b1 = bias[0:1, :]
    b2 = bias[1:2, :]
    b3 = bias[2:3, :out_n]

    x = x_ref[...]
    h1 = jnp.dot(x.astype(wd), w1_ref[...],
                 preferred_element_type=jnp.float32) + b1
    h1 = jnp.maximum(h1, 0.0)

    h2 = jnp.dot(h1.astype(wd), w2_ref[...],
                 preferred_element_type=jnp.float32) + b2
    h2 = jnp.maximum(h2, 0.0)

    q = jnp.dot(h2.astype(wd), w3_ref[...],
                preferred_element_type=jnp.float32)
    # Slice before the store: only the narrow Q block goes back to HBM.
    o_ref[...] = (q[:, :out_n] + b3).astype(o_ref.dtype)


def init_params(key, state_dim, action_dim, hidden=24, weight_dtype=jnp.bfloat16):
    """PyTorch nn.Linear default init U(-1/sqrt(fan_in), ..); hidden dim padded
    to 128 lanes, biases packed into one (3,128) slab, weights cast to the MXU
    operand dtype (use weight_dtype=jnp.float32 for exact PyTorch semantics)."""
    ks = jax.random.split(key, 6)
    hp = _round_up(hidden, LANE)  # 24 -> 128

    def linear(kw, kb, fan_in, fan_out):
        bound = float(fan_in) ** -0.5
        w = jax.random.uniform(kw, (fan_in, fan_out), jnp.float32, -bound, bound)
        b = jax.random.uniform(kb, (fan_out,), jnp.float32, -bound, bound)
        return w, b

    w1, b1 = linear(ks[0], ks[1], state_dim, hidden)
    w2, b2 = linear(ks[2], ks[3], hidden, hidden)
    w3, b3 = linear(ks[4], ks[5], hidden, action_dim)

    w1p = jnp.pad(w1, ((0, 0), (0, hp - hidden))).astype(weight_dtype)
    w2p = jnp.pad(w2, ((0, hp - hidden), (0, hp - hidden))).astype(weight_dtype)
    w3p = jnp.pad(w3, ((0, hp - hidden), (0, LANE - action_dim))).astype(weight_dtype)

    bias = jnp.zeros((3, LANE), jnp.float32)
    bias = bias.at[0, :hidden].set(b1)
    bias = bias.at[1, :hidden].set(b2)
    bias = bias.at[2, :action_dim].set(b3)
    return (w1p, w2p, w3p, bias)


@functools.partial(jax.jit, static_argnames=("action_dim", "block_b"))
def dqn_forward(x, params, action_dim, block_b=2048):
    w1, w2, w3, bias = params
    B, S = x.shape
    H = w1.shape[1]                       # padded hidden (128)
    out_pad = _round_up(action_dim, 8)    # narrow Q output (2 -> 8)

    tb = _pick_tile(B, block_b)
    n_blocks = pl.cdiv(B, tb)
    b_pad = n_blocks * tb
    if b_pad != B:
        # Ragged-tail fallback only (copies x); avoided whenever some multiple
        # of 8 <= tb divides B, which covers the common replay-batch sizes.
        x = jnp.pad(x, ((0, b_pad - B), (0, 0)))

    def resident(a):
        # Whole array, same block every grid step -> stays VMEM-resident.
        return pl.BlockSpec(a.shape, lambda i: (0,) * a.ndim)

    flops = 2 * b_pad * (S * H + H * H + H * H)
    bytes_accessed = (
        b_pad * S * x.dtype.itemsize
        + sum(int(p.size) * p.dtype.itemsize for p in params)
        + b_pad * out_pad * 4                      # real (narrow) output bytes
    )

    q_pad = pl.pallas_call(
        dqn_kernel,
        out_shape=jax.ShapeDtypeStruct((b_pad, out_pad), jnp.float32),
        grid=(n_blocks,),
        in_specs=[
            pl.BlockSpec((tb, S), lambda i: (i, 0)),
            resident(w1), resident(w2), resident(w3), resident(bias),
        ],
        out_specs=pl.BlockSpec((tb, out_pad), lambda i: (i, 0)),
        compiler_params=pltpu.CompilerParams(
            dimension_semantics=("parallel",)),
        cost_estimate=pl.CostEstimate(
            flops=flops, transcendentals=0, bytes_accessed=bytes_accessed),
    )(x, w1, w2, w3, bias)

    # Padded batch rows (if any) and padded action lanes carry garbage/zeros;
    # slice back to the true shape.  No in-kernel reduction uses them.
    return q_pad[:B, :action_dim]


def dqn_reference(x, params, action_dim):
    """Pure-JAX reference using the same padded params / operand dtype."""
    w1, w2, w3, bias = params
    wd = w1.dtype
    b1, b2, b3 = bias[0:1, :], bias[1:2, :], bias[2:3, :]
    h1 = jnp.maximum(
        jnp.dot(x.astype(wd), w1, preferred_element_type=jnp.float32) + b1, 0.0)
    h2 = jnp.maximum(
        jnp.dot(h1.astype(wd), w2, preferred_element_type=jnp.float32) + b2, 0.0)
    q = jnp.dot(h2.astype(wd), w3, preferred_element_type=jnp.float32) + b3
    return q[:, :action_dim]


if __name__ == "__main__":
    key = jax.random.PRNGKey(0)
    k_x, k_p = jax.random.split(key)

    batch, state_dim, action_dim = 8, 4, 2  # CartPole-like small shapes
    x = jax.random.normal(k_x, (batch, state_dim), jnp.float32)
    params = init_params(k_p, state_dim, action_dim)

    q = dqn_forward(x, params, action_dim)
    q = jax.block_until_ready(q)

    q_ref = dqn_reference(x, params, action_dim)
    assert q.shape == (batch, action_dim)
    assert jnp.allclose(q, q_ref, atol=1e-4, rtol=1e-4), (
        float(jnp.max(jnp.abs(q - q_ref))))
    print("KERNEL_OK")
</pallas_src>

<mosaic_0001>
module attributes {stable_mosaic.version = 11 : i64} {
  func.func @dqn_kernel(%arg0: i32, %arg1: memref<8x4xf32, #tpu.memory_space<vmem>>, %arg2: memref<4x128xbf16, #tpu.memory_space<vmem>>, %arg3: memref<128x128xbf16, #tpu.memory_space<vmem>>, %arg4: memref<128x128xbf16, #tpu.memory_space<vmem>>, %arg5: memref<3x128xf32, #tpu.memory_space<vmem>>, %arg6: memref<8x8xf32, #tpu.memory_space<vmem>>) attributes {dimension_semantics = [#tpu.dimension_semantics<parallel>], iteration_bounds = array<i64: 1>, scalar_prefetch = 0 : i64, scratch_operands = 0 : i64, tpu.core_type = #tpu.core_type<tc>, window_params = [{transform_indices = @transform_0, window_bounds = array<i64: 8, 4>}, {pipeline_mode = #tpu.pipeline_mode<synchronous>, transform_indices = @transform_1, window_bounds = array<i64: 4, 128>}, {pipeline_mode = #tpu.pipeline_mode<synchronous>, transform_indices = @transform_2, window_bounds = array<i64: 128, 128>}, {pipeline_mode = #tpu.pipeline_mode<synchronous>, transform_indices = @transform_3, window_bounds = array<i64: 128, 128>}, {pipeline_mode = #tpu.pipeline_mode<synchronous>, transform_indices = @transform_4, window_bounds = array<i64: 3, 128>}, {transform_indices = @transform_5, window_bounds = array<i64: 8, 8>}]} {
    %c0 = arith.constant 0 : index
    %c0_0 = arith.constant 0 : index
    %0 = vector.load %arg5[%c0, %c0_0] : memref<3x128xf32, #tpu.memory_space<vmem>>, vector<3x128xf32>
    %1 = vector.extract_strided_slice %0 {offsets = [0, 0], sizes = [1, 128], strides = [1, 1]} : vector<3x128xf32> to vector<1x128xf32>
    %2 = vector.extract_strided_slice %0 {offsets = [1, 0], sizes = [1, 128], strides = [1, 1]} : vector<3x128xf32> to vector<1x128xf32>
    %3 = vector.extract_strided_slice %0 {offsets = [2, 0], sizes = [1, 8], strides = [1, 1]} : vector<3x128xf32> to vector<1x8xf32>
    %c0_1 = arith.constant 0 : index
    %c0_2 = arith.constant 0 : index
    %4 = vector.load %arg1[%c0_1, %c0_2] : memref<8x4xf32, #tpu.memory_space<vmem>>, vector<8x4xf32>
    %5 = arith.truncf %4 : vector<8x4xf32> to vector<8x4xbf16>
    %c0_3 = arith.constant 0 : index
    %c0_4 = arith.constant 0 : index
    %6 = vector.load %arg2[%c0_3, %c0_4] : memref<4x128xbf16, #tpu.memory_space<vmem>>, vector<4x128xbf16>
    %cst = arith.constant dense<0.000000e+00> : vector<8x128xf32>
    %7 = tpu.matmul %5, %6, %cst {dimension_numbers = #tpu.dot_dimension_numbers<[1], [0], [0], [1], [0, 0, 1, 1], [], []>} : vector<8x4xbf16>, vector<4x128xbf16>, vector<8x128xf32> -> vector<8x128xf32>
    %8 = vector.broadcast %1 : vector<1x128xf32> to vector<8x128xf32>
    %9 = arith.addf %7, %8 : vector<8x128xf32>
    %cst_5 = arith.constant 0.000000e+00 : f32
    %10 = vector.broadcast %cst_5 : f32 to vector<8x128xf32>
    %11 = arith.maximumf %9, %10 : vector<8x128xf32>
    %12 = arith.truncf %11 : vector<8x128xf32> to vector<8x128xbf16>
    %c0_6 = arith.constant 0 : index
    %c0_7 = arith.constant 0 : index
    %13 = vector.load %arg3[%c0_6, %c0_7] : memref<128x128xbf16, #tpu.memory_space<vmem>>, vector<128x128xbf16>
    %cst_8 = arith.constant dense<0.000000e+00> : vector<8x128xf32>
    %14 = tpu.matmul %12, %13, %cst_8 {dimension_numbers = #tpu.dot_dimension_numbers<[1], [0], [0], [1], [0, 0, 1, 1], [], []>} : vector<8x128xbf16>, vector<128x128xbf16>, vector<8x128xf32> -> vector<8x128xf32>
    %15 = vector.broadcast %2 : vector<1x128xf32> to vector<8x128xf32>
    %16 = arith.addf %14, %15 : vector<8x128xf32>
    %cst_9 = arith.constant 0.000000e+00 : f32
    %17 = vector.broadcast %cst_9 : f32 to vector<8x128xf32>
    %18 = arith.maximumf %16, %17 : vector<8x128xf32>
    %19 = arith.truncf %18 : vector<8x128xf32> to vector<8x128xbf16>
    %c0_10 = arith.constant 0 : index
    %c0_11 = arith.constant 0 : index
    %20 = vector.load %arg4[%c0_10, %c0_11] : memref<128x128xbf16, #tpu.memory_space<vmem>>, vector<128x128xbf16>
    %cst_12 = arith.constant dense<0.000000e+00> : vector<8x128xf32>
    %21 = tpu.matmul %19, %20, %cst_12 {dimension_numbers = #tpu.dot_dimension_numbers<[1], [0], [0], [1], [0, 0, 1, 1], [], []>} : vector<8x128xbf16>, vector<128x128xbf16>, vector<8x128xf32> -> vector<8x128xf32>
    %22 = vector.extract_strided_slice %21 {offsets = [0, 0], sizes = [8, 8], strides = [1, 1]} : vector<8x128xf32> to vector<8x8xf32>
    %23 = vector.broadcast %3 : vector<1x8xf32> to vector<8x8xf32>
    %24 = arith.addf %22, %23 : vector<8x8xf32>
    %c0_13 = arith.constant 0 : index
    %c0_14 = arith.constant 0 : index
    %25 = vector.load %arg6[%c0_13, %c0_14] : memref<8x8xf32, #tpu.memory_space<vmem>>, vector<8x8xf32>
    tpu.vector_store %arg6[%c0_13, %c0_14], %24 {strides = array<i32>} : memref<8x8xf32, #tpu.memory_space<vmem>>, vector<8x8xf32>,
    return
  }
  func.func @transform_0(%arg0: i32) -> (i32, i32) {
    %c0_i32 = arith.constant 0 : i32
    %c0_i32_0 = arith.constant 0 : i32
    return %arg0, %c0_i32 : i32, i32
  }
  func.func @transform_1(%arg0: i32) -> (i32, i32) {
    %c0_i32 = arith.constant 0 : i32
    %c0_i32_0 = arith.constant 0 : i32
    %c0_i32_1 = arith.constant 0 : i32
    return %c0_i32, %c0_i32_0 : i32, i32
  }
  func.func @transform_2(%arg0: i32) -> (i32, i32) {
    %c0_i32 = arith.constant 0 : i32
    %c0_i32_0 = arith.constant 0 : i32
    %c0_i32_1 = arith.constant 0 : i32
    return %c0_i32, %c0_i32_0 : i32, i32
  }
  func.func @transform_3(%arg0: i32) -> (i32, i32) {
    %c0_i32 = arith.constant 0 : i32
    %c0_i32_0 = arith.constant 0 : i32
    %c0_i32_1 = arith.constant 0 : i32
    return %c0_i32, %c0_i32_0 : i32, i32
  }
  func.func @transform_4(%arg0: i32) -> (i32, i32) {
    %c0_i32 = arith.constant 0 : i32
    %c0_i32_0 = arith.constant 0 : i32
    %c0_i32_1 = arith.constant 0 : i32
    return %c0_i32, %c0_i32_0 : i32, i32
  }
  func.func @transform_5(%arg0: i32) -> (i32, i32) {
    %c0_i32 = arith.constant 0 : i32
    %c0_i32_0 = arith.constant 0 : i32
    return %arg0, %c0_i32 : i32, i32
  }
}

</mosaic_0001>

<bundles_post_ra>
// kernel: dqn_forward.1
= control target key start
LH: loop header
LB: loop body
LE: loop exit
PB: predicated region body
PF: predicated region fallthrough
CT: control target
= control target key end

     0   :  { %10 = vsyncpa [#allocation3], 0  ;;  %s437_s0 = inlined_call_operand.vmem [shape: f32[8,4], index: 0, kind: input, shape index: {}]   ;;  %s438_s1 = inlined_call_operand.vmem [shape: bf16[4,128], index: 1, kind: input, shape index: {}]   ;;  %s439_s2 = inlined_call_operand.hbm [shape: bf16[128,128], index: 2, kind: input, shape index: {}]   ;;  %s440_s3 = inlined_call_operand.hbm [shape: bf16[128,128], index: 3, kind: input, shape index: {}]   ;;  %s441_s4 = inlined_call_operand.vmem [shape: f32[3,128], index: 4, kind: input, shape index: {}]   ;;  %s442_s5 = inlined_call_operand.vmem [shape: f32[8,8], index: 5, kind: output, shape index: {}]  }
   0x1   :  { %s20_s20 = sshll.u32 %s439_s2, 4  ;;  %s21_s20 = int_to_ptr.hbm [resolvable:$true] %s20_s20 }
   0x2   :  { %11 = vsyncpa [#allocation5], 0  ;;  %s385_s21 = smov [#allocation2]   ;;  %s33_s25 = sshll.u32 %s440_s3, 4  ;;  %s34_s25 = int_to_ptr.hbm [resolvable:$true] %s33_s25 }
   0x3   :  { %s22_s22 = sshll.u32 %s385_s21, 4  ;;  %s386_s26 = smov 64   ;;  %s23_s22 = int_to_ptr.vmem [resolvable:$true] %s22_s22 }
   0x4   :  { %s387_s27 = smov 4   ;;  %s388_s28 = smov [#allocation4]  }
   0x5   :  { %28 = dma.hbm_to_vmem [thread:$0]  %s21_s20, 1024, %s23_s22, [#allocation3], %s386_s26, %s386_s26, %s387_s27  }
   0x6   :  { %s35_s29 = sshll.u32 %s388_s28, 4  ;;  %s36_s29 = int_to_ptr.vmem [resolvable:$true] %s35_s29 }
   0x7   :  { %41 = dma.hbm_to_vmem [thread:$0]  %s34_s25, 1024, %s36_s29, [#allocation5], %s386_s26, %s386_s26, %s387_s27  }
   0x8   :  { %381 = dma.done.wait [#allocation3], 1024  }
   0x9   :  { %382 = vsyncadd [#allocation3], 4294966272 }
   0xa   :  { %383 = dma.done.wait [#allocation5], 1024  }
   0xb   :  { %384 = vsyncadd [#allocation5], 4294966272  ;;  %vm62_vm0 = vcmask 1041408   ;;  %v56_v0 = vld [vmem:[%s438_s1] sm:$0x3]  ;;  %v320_v2 = vld [vmem:[#allocation2 + $0x38] sm:$0xff] }
   0xc   :  { %v54_v1 = vld [vmem:[%s437_s0] sm:$0xff]  ;;  %v64_v3 = vsel %vm62_vm0, %v56_v0, 0  ;;  %vm58_vm1 = vcmask 31744   ;;  %146 = vmatpush.bf16.msra.mxu1 %v320_v2  ;;  %v319_v5 = vld [vmem:[#allocation2 + $0x30] sm:$0xff]  ;;  %v318_v6 = vld [vmem:[#allocation2 + $0x28] sm:$0xff]  ;;  %vm240_vm2 = vcmask 64512  }
   0xd   :  { %v55_v4 = vpack.c.bf16 %v54_v1, %v54_v1  ;;  %73 = vmatpush.bf16.msra.mxu0 %v64_v3  ;;  %v317_v7 = vld [vmem:[#allocation2 + $0x20] sm:$0xff]  ;;  %v316_v8 = vld [vmem:[#allocation2 + $0x18] sm:$0xff]  ;;  %v315_v9 = vld [vmem:[#allocation2 + $0x10] sm:$0xff] }
   0xe   :  { %v314_v10 = vld [vmem:[#allocation2 + $0x8] sm:$0xff]  ;;  %v313_v11 = vld [vmem:[#allocation2] sm:$0xff]  ;;  %v328_v12 = vld [vmem:[#allocation4 + $0x38] sm:$0xff] }
   0xf   :  { %225 = vmatpush.bf16.msra.mxu2 %v328_v12  ;;  %v327_v13 = vld [vmem:[#allocation4 + $0x30] sm:$0xff]  ;;  %v326_v14 = vld [vmem:[#allocation4 + $0x28] sm:$0xff]  ;;  %v325_v15 = vld [vmem:[#allocation4 + $0x20] sm:$0xff] }
  0x10   :  { %248 = vmatmul.msk.bf16.vlgmr.msra.gmra.mxu0 %vm58_vm1, %v55_v4  ;;  %147 = vmatpush.bf16.msra.mxu1 %v319_v5  ;;  %v324_v16 = vld [vmem:[#allocation4 + $0x18] sm:$0xff]  ;;  %v53_v17 = vld [vmem:[%s441_s4] sm:$0x7]  ;;  %v323_v18 = vld [vmem:[#allocation4 + $0x10] sm:$0xff] }
  0x11   :  { %v57_v19 = vperm.slane %v53_v17, 0  ;;  %v322_v25 = vld [vmem:[#allocation4 + $0x8] sm:$0xff]  ;;  %v321_v26 = vld [vmem:[#allocation4] sm:$0xff]  ;;  %v97_v27 = vperm.slane %v53_v17, 1  ;;  %v238_v33 = vperm.slane %v53_v17, 2 }
  0x13   :  { %226 = vmatpush.bf16.msra.mxu2 %v327_v13 }
  0x14   :  { %148 = vmatpush.bf16.msra.mxu1 %v318_v6 }
  0x17   :  { %227 = vmatpush.bf16.msra.mxu2 %v326_v14 }
  0x18   :  { %149 = vmatpush.bf16.msra.mxu1 %v317_v7 }
  0x1b   :  { %228 = vmatpush.bf16.msra.mxu2 %v325_v15 }
  0x1c   :  { %150 = vmatpush.bf16.msra.mxu1 %v316_v8 }
  0x1f   :  { %229 = vmatpush.bf16.msra.mxu2 %v324_v16 }
  0x20   :  { %151 = vmatpush.bf16.msra.mxu1 %v315_v9 }
  0x23   :  { %230 = vmatpush.bf16.msra.mxu2 %v323_v18 }
  0x24   :  { %152 = vmatpush.bf16.msra.mxu1 %v314_v10 }
  0x27   :  { %231 = vmatpush.bf16.msra.mxu2 %v322_v25 }
  0x28   :  { %153 = vmatpush.bf16.msra.mxu1 %v313_v11 }
  0x2b   :  { %232 = vmatpush.bf16.msra.mxu2 %v321_v26 }
  0x8d   :  { %v75_v20 = vpop.f32.mrf.mxu0 }
  0x8e   :  { %v76_v21 = vadd.f32 %v75_v20, %v57_v19 }
  0x90   :  { %v79_v22 = vmax.f32 %v76_v21, 0.0 }
  0x92   :  { %v80_v23 = vpack.c.bf16 %v79_v22, %v79_v22 }
  0x94   :  { %154 = vmatmul.bf16.vlgmr.msra.gmra.mxu1 %v80_v23 }
  0x95   :  { %v77_v24 = vpop.f32.mrf.mxu0 }
 0x111   :  { %v155_v28 = vpop.f32.mrf.mxu1 }
 0x112   :  { %v156_v29 = vadd.f32 %v155_v28, %v97_v27 }
 0x114   :  { %v159_v30 = vmax.f32 %v156_v29, 0.0 }
 0x116   :  { %v160_v31 = vpack.c.bf16 %v159_v30, %v159_v30 }
 0x118   :  { %233 = vmatmul.bf16.vlgmr.msra.gmra.mxu2 %v160_v31 }
 0x119   :  { %v157_v32 = vpop.f32.mrf.mxu1 }
 0x19b   :  { %v234_v34 = vpop.f32.mrf.mxu2 }
 0x19c   :  { %v239_v35 = vadd.f32 %v238_v33, %v234_v34 }
 0x19e   :  { %241 = vst.msk [vmem:[%s442_s5] sm:$0xff] %vm240_vm2, %v239_v35 }
 0x1a3   :  { %v236_v36 = vpop.f32.mrf.mxu2 }
 0x1a4   :  { %246 = vsyncpa [#allocation3], 1 }
 0x1a5   :  { %247 = vsyncpa [#allocation5], 1 }

</bundles_post_ra>
